<compile_context>
chip_gen: v5e
topology: v5e:2x2
jax: 0.10.0
libtpu: 0.0.40
codegen_flags: <defaults>
</compile_context>

<pallas_src>
import functools

import jax
import jax.numpy as jnp
from jax.experimental import pallas as pl
from jax.experimental.pallas import tpu as pltpu


VMEM_LIMIT = 48 * 1024 * 1024   # headroom on v5e/v6e (128 MiB) and v7x (64 MiB)


# ----------------------------------------------------------------------------
# small helpers
# ----------------------------------------------------------------------------

def _round_up(x, m):
    return ((x + m - 1) // m) * m


def _choose_tile(m, target, unit=128):
    """Largest tile <= target that is a multiple of 128 lanes (covers m)."""
    return min(target, _round_up(m, unit))


def _choose_rows(h, target):
    """Largest divisor of h that is <= target (conv row-tile height)."""
    r = min(target, h)
    while h % r != 0:
        r -= 1
    return r


def _pad_axis(x, axis, multiple):
    pad = (-x.shape[axis]) % multiple
    if pad == 0:
        return x
    widths = [(0, 0)] * x.ndim
    widths[axis] = (0, pad)
    return jnp.pad(x, widths)


# ----------------------------------------------------------------------------
# Pallas kernels
# ----------------------------------------------------------------------------

def _conv3x3_dual_kernel(xp_ref, w_ref, b_ref, o_ref, *, rows, W):
    """3x3 'same' conv + bias + ReLU for one row tile (1-row halo), 2 heads.

    xp_ref: (rows+2, W+2, Cin) bf16  halo'd, zero-padded image tile
    w_ref : (9*Cin, Co)        bf16  tap-major weights (feat || match concat)
    b_ref : (1, Co)            f32
    o_ref : (rows*W, Co)       f32
    """
    xp = xp_ref[...].astype(jnp.float32)
    taps = []
    for dy in range(3):
        for dx in range(3):
            taps.append(xp[dy:dy + rows, dx:dx + W, :].reshape(rows * W, -1))
    # Single K=27 im2col matmul (one MXU push, one f32 accumulator, one bf16
    # cast) instead of 9 K=3 matmuls with repeated accumulate passes.
    patches = jnp.concatenate(taps, axis=-1)                    # (rows*W, 27)
    acc = jnp.dot(patches.astype(jnp.bfloat16), w_ref[...],
                  preferred_element_type=jnp.float32)           # (rows*W, Co)
    o_ref[...] = jnp.maximum(acc + b_ref[...], 0.0).astype(o_ref.dtype)


def conv3x3_dual_pallas(x_nhwc, w, b, rows_target=64):
    """Fused 3x3 conv + ReLU over V views; output channels = both heads.

    x_nhwc: (V, H, W, Cin). w: (9*Cin, Co). b: (Co,). -> (V, H, W, Co).
    """
    V, H, W, Cin = x_nhwc.shape
    Co = w.shape[-1]
    rows = _choose_rows(H, rows_target)
    T = H // rows
    # bf16 image DMA (halves the biggest HBM->VMEM transfer); zero 'same' pad.
    xp = jnp.pad(x_nhwc.astype(jnp.bfloat16), ((0, 0), (1, 1), (1, 1), (0, 0)))
    # Row tiles with a duplicated 1-row halo, built once in a fused XLA pass.
    xt = jnp.stack([xp[:, i * rows:i * rows + rows + 2] for i in range(T)],
                   axis=1)
    xt = xt.reshape(V * T, rows + 2, W + 2, Cin)
    w2 = w.astype(jnp.bfloat16)
    b2 = b.reshape(1, Co).astype(jnp.float32)
    kernel = functools.partial(_conv3x3_dual_kernel, rows=rows, W=W)
    out = pl.pallas_call(
        kernel,
        out_shape=jax.ShapeDtypeStruct((V * T, rows * W, Co), jnp.float32),
        grid=(V * T,),
        in_specs=[
            pl.BlockSpec((None, rows + 2, W + 2, Cin), lambda g: (g, 0, 0, 0)),
            pl.BlockSpec((9 * Cin, Co), lambda g: (0, 0)),
            pl.BlockSpec((1, Co), lambda g: (0, 0)),
        ],
        out_specs=pl.BlockSpec((None, rows * W, Co), lambda g: (g, 0, 0)),
        compiler_params=pltpu.CompilerParams(
            dimension_semantics=("parallel",),
            vmem_limit_bytes=VMEM_LIMIT),
    )(xt, w2, b2)
    return out.reshape(V, H, W, Co)


def _vol_agg_reg_kernel(fm_ref, cnt_ref, wt_ref, b_ref, o_ref):
    """Per-voxel mean/var across views + 1x1x1 reg conv + ReLU + vis gate.

    Feature-major layout: voxels ride the lane axis end-to-end, so the big
    fm DMA, the cnt row and the output store are all lane-dense.

    fm_ref : (V, Cf, tm)  bf16  mask-premultiplied per-view sampled features
    cnt_ref: (1, tm)      f32   number of views that see each voxel
    wt_ref : (Cvol, 2*Cf) bf16  reg weights, transposed ([mean ; var] on K)
    b_ref  : (Cvol, 1)    f32
    o_ref  : (Cvol, tm)   f32   regularized, visibility-masked feature volume
    """
    fm = fm_ref[...].astype(jnp.float32)
    cnt = cnt_ref[...]
    inv = 1.0 / jnp.maximum(cnt, 1.0)        # exact: cnt is a tiny integer
    s = jnp.sum(fm, axis=0)                  # (Cf, tm)
    s2 = jnp.sum(fm * fm, axis=0)            # mask binary -> (m*f)^2 = m*f^2
    mean = s * inv
    # NOTE: E[x^2]-mean^2 in f32 (bf16 inputs) can cancel for tiny variances;
    # clamped at 0.  Use a two-pass form if variance fidelity matters.
    var = jnp.maximum(s2 * inv - mean * mean, 0.0)
    cat = jnp.concatenate([mean, var], axis=0)                 # (2*Cf, tm)
    acc = jnp.dot(wt_ref[...], cat.astype(jnp.bfloat16),
                  preferred_element_type=jnp.float32)          # (Cvol, tm)
    acc = jnp.maximum(acc + b_ref[...], 0.0)
    gate = (cnt >= 1.0).astype(jnp.float32)                    # min_vis_view=1
    o_ref[...] = (acc * gate).astype(o_ref.dtype)


def vol_agg_reg_pallas(fm_t, cnt, reg_w, reg_b, tm_target=2048):
    """fm_t: (V, Cf, M) masked features; cnt: (1, M) -> volume (Cvol, M)."""
    V, Cf, M = fm_t.shape
    Cvol = reg_w.shape[-1]
    tm = _choose_tile(M, tm_target)
    fm_p = _pad_axis(fm_t.astype(jnp.bfloat16), 2, tm)
    cnt_p = _pad_axis(cnt.astype(jnp.float32), 1, tm)
    Mp = fm_p.shape[2]
    wt = jnp.transpose(reg_w).astype(jnp.bfloat16)             # (Cvol, 2*Cf)
    b2 = reg_b.reshape(Cvol, 1).astype(jnp.float32)
    out = pl.pallas_call(
        _vol_agg_reg_kernel,
        out_shape=jax.ShapeDtypeStruct((Cvol, Mp), jnp.float32),
        grid=(Mp // tm,),
        in_specs=[
            pl.BlockSpec((V, Cf, tm), lambda i: (0, 0, i)),
            pl.BlockSpec((1, tm), lambda i: (0, i)),
            pl.BlockSpec((Cvol, 2 * Cf), lambda i: (0, 0)),
            pl.BlockSpec((Cvol, 1), lambda i: (0, 0)),
        ],
        out_specs=pl.BlockSpec((Cvol, tm), lambda i: (0, i)),
        compiler_params=pltpu.CompilerParams(
            dimension_semantics=("parallel",),
            vmem_limit_bytes=VMEM_LIMIT),
    )(fm_p, cnt_p, wt, b2)
    return out[:, :M]


def _sdf_mlp_kernel(xt_ref, w1t_ref, b1_ref, w2_ref, b2_ref, o_ref):
    """2-layer SDF MLP, feature-major layout (points ride the lane axis).

    xt_ref : (K, tm)  bf16  [pts ; vol_feat]
    w1t_ref: (Hid, K) bf16 ; b1_ref: (Hid, 1) f32
    w2_ref : (Hid, 1) f32  ; b2_ref: (1, 1)   f32
    o_ref  : (1, tm)  f32   lane-dense SDF row
    """
    h = jnp.dot(w1t_ref[...], xt_ref[...], preferred_element_type=jnp.float32)
    h = jnp.maximum(h + b1_ref[...], 0.0)                      # (Hid, tm)
    # Layer 2 has one output unit: VPU multiply + sublane reduce instead of an
    # N=1 MXU matmul; the store stays a full lane-dense row.
    out = jnp.sum(h * w2_ref[...], axis=0, keepdims=True) + b2_ref[...]
    o_ref[...] = out.astype(o_ref.dtype)


def sdf_mlp_pallas(xt, w1, b1, w2, b2, tm_target=4096):
    """xt: (K, M) feature-major MLP input -> sdf (M, 1)."""
    K, M = xt.shape
    Hid = w1.shape[1]
    tm = _choose_tile(M, tm_target)
    xt_p = _pad_axis(xt.astype(jnp.bfloat16), 1, tm)
    Mp = xt_p.shape[1]
    out = pl.pallas_call(
        _sdf_mlp_kernel,
        out_shape=jax.ShapeDtypeStruct((1, Mp), jnp.float32),
        grid=(Mp // tm,),
        in_specs=[
            pl.BlockSpec((K, tm), lambda i: (0, i)),
            pl.BlockSpec((Hid, K), lambda i: (0, 0)),
            pl.BlockSpec((Hid, 1), lambda i: (0, 0)),
            pl.BlockSpec((Hid, 1), lambda i: (0, 0)),
            pl.BlockSpec((1, 1), lambda i: (0, 0)),
        ],
        out_specs=pl.BlockSpec((1, tm), lambda i: (0, i)),
        compiler_params=pltpu.CompilerParams(
            dimension_semantics=("parallel",),
            vmem_limit_bytes=VMEM_LIMIT),
    )(xt_p,
      jnp.transpose(w1).astype(jnp.bfloat16),
      b1.reshape(Hid, 1).astype(jnp.float32),
      w2.reshape(Hid, 1).astype(jnp.float32),
      b2.reshape(1, 1).astype(jnp.float32))
    return out[:, :M].reshape(M, 1)


# ----------------------------------------------------------------------------
# Plain-JAX glue (geometry, data-dependent gathers)
# ----------------------------------------------------------------------------

def make_voxel_coords(R):
    lin = jnp.linspace(-1.0, 1.0, R)
    gx, gy, gz = jnp.meshgrid(lin, lin, lin, indexing="ij")
    return jnp.stack([gx, gy, gz], axis=-1).reshape(-1, 3)   # flat = ix*R*R+iy*R+iz


def project_points(coords, intrs, c2ws, H, W):
    """World pts -> pixel coords per view.  Returns uv (V,M,2), valid (V,M)."""
    w2c = jnp.linalg.inv(c2ws)                                   # (V,4,4)
    hom = jnp.concatenate([coords, jnp.ones((coords.shape[0], 1))], axis=-1)
    cam = jnp.einsum("vij,mj->vmi", w2c, hom)[..., :3]           # (V,M,3)
    pix = jnp.einsum("vij,vmj->vmi", intrs, cam)                 # (V,M,3)
    z = jnp.maximum(pix[..., 2:3], 1e-6)
    uv = pix[..., :2] / z
    valid = ((cam[..., 2] > 0.05)
             & (uv[..., 0] >= 0.0) & (uv[..., 0] <= W - 1)
             & (uv[..., 1] >= 0.0) & (uv[..., 1] <= H - 1)).astype(jnp.float32)
    return uv, valid


def bilinear_sample_views_cm(feat_nhwc, uv):
    """Per-view bilinear sampling, channel-major output (V, C, M)."""
    # TODO(synk): data-dependent gather (grid_sample equivalent) stays in XLA.
    V, H, W, C = feat_nhwc.shape
    feat_pl = jnp.transpose(feat_nhwc, (0, 3, 1, 2))             # (V, C, H, W)

    def one(f, uv1):                                             # f: (C, H, W)
        u = jnp.clip(uv1[:, 0], 0.0, W - 1.0)
        v = jnp.clip(uv1[:, 1], 0.0, H - 1.0)
        x0 = jnp.floor(jnp.clip(u, 0.0, W - 1 - 1e-6)).astype(jnp.int32)
        y0 = jnp.floor(jnp.clip(v, 0.0, H - 1 - 1e-6)).astype(jnp.int32)
        x1 = jnp.minimum(x0 + 1, W - 1)
        y1 = jnp.minimum(y0 + 1, H - 1)
        wx = (u - x0.astype(jnp.float32))[None, :]
        wy = (v - y0.astype(jnp.float32))[None, :]
        f00, f01 = f[:, y0, x0], f[:, y0, x1]
        f10, f11 = f[:, y1, x0], f[:, y1, x1]
        return ((1 - wy) * ((1 - wx) * f00 + wx * f01)
                + wy * ((1 - wx) * f10 + wx * f11))             # (C, M)

    return jax.vmap(one)(feat_pl, uv)


def trilinear_sample_cm(vol_t, pts, R):
    """vol_t: (C, R^3) flattened ix*R*R+iy*R+iz; pts (N,3) in [-1,1] -> (C, N)."""
    # TODO(synk): data-dependent gather stays in XLA.
    g = jnp.clip((pts + 1.0) * 0.5 * (R - 1), 0.0, R - 1.0)
    g0 = jnp.floor(jnp.clip(g, 0.0, R - 1 - 1e-6)).astype(jnp.int32)
    g1 = jnp.minimum(g0 + 1, R - 1)
    w = g - g0.astype(jnp.float32)
    corners = (g0, g1)
    out = jnp.zeros((vol_t.shape[0], pts.shape[0]), jnp.float32)
    for dx in (0, 1):
        for dy in (0, 1):
            for dz in (0, 1):
                ix, iy, iz = corners[dx][:, 0], corners[dy][:, 1], corners[dz][:, 2]
                wx = w[:, 0] if dx else 1.0 - w[:, 0]
                wy = w[:, 1] if dy else 1.0 - w[:, 1]
                wz = w[:, 2] if dz else 1.0 - w[:, 2]
                idx = ix * R * R + iy * R + iz
                out = out + (wx * wy * wz)[None, :] * vol_t[:, idx]
    return out


# ----------------------------------------------------------------------------
# GenS forward (has_vol == False branch)
# ----------------------------------------------------------------------------

def init_gens_params(key, cin=3, cf=16, cvol=16, hidden=32, vol_res=8):
    ks = jax.random.split(key, 6)
    s = 0.1

    def w(k, shape):   # f32 master weights; bf16 casts happen at call time
        return s * jax.random.normal(k, shape, jnp.float32)

    return {
        "vol_res": vol_res,
        "feat_w": w(ks[0], (9 * cin, cf)),
        "feat_b": jnp.zeros((cf,), jnp.float32),
        "mfeat_w": w(ks[1], (9 * cin, cf)),
        "mfeat_b": jnp.zeros((cf,), jnp.float32),
        "reg_w": w(ks[2], (2 * cf, cvol)),
        "reg_b": jnp.zeros((cvol,), jnp.float32),
        "w1": w(ks[3], (3 + cvol, hidden)),
        "b1": jnp.zeros((hidden,), jnp.float32),
        "w2": w(ks[4], (hidden, 1)),
        "b2": jnp.zeros((1,), jnp.float32),
    }


def gens_forward(params, mode, ipts, cos_anneal_ratio=1.0, step=None,
                 conv_rows_target=64):
    imgs = ipts["imgs"]            # (V, 3, H, W)  NCHW
    intrs = ipts["intrs"]          # (V, 3, 3)
    c2ws = ipts["c2ws"]            # (V, 4, 4)
    pts = ipts["pts"]              # (N, 3) query points in [-1,1]^3
    V, Cin, H, W = imgs.shape
    R = params["vol_res"]
    cf = params["feat_w"].shape[-1]

    # --- feature_network + match_feature_network: ONE fused conv kernel ---
    x = jnp.transpose(imgs, (0, 2, 3, 1))                        # NHWC
    wcat = jnp.concatenate([params["feat_w"], params["mfeat_w"]], axis=1)
    bcat = jnp.concatenate([params["feat_b"], params["mfeat_b"]], axis=0)
    feats = conv3x3_dual_pallas(x, wcat, bcat, rows_target=conv_rows_target)
    feat = feats[..., :cf]
    match_feat = jax.lax.stop_gradient(feats[..., cf:])          # frozen head

    # --- volume.agg_mean_var + reg_network + mask: ONE fused kernel -------
    coords = make_voxel_coords(R)                                # (R^3, 3)
    uv, valid = project_points(coords, intrs, c2ws, H, W)        # (V,M,2),(V,M)
    sampled_t = bilinear_sample_views_cm(feat, uv)               # (V, cf, R^3)
    fm_t = (sampled_t * valid[:, None, :]).astype(jnp.bfloat16)  # bf16 DMA
    cnt = jnp.sum(valid, axis=0)[None, :]                        # (1, R^3)
    mask_volume = (cnt >= 1.0).astype(jnp.float32).reshape(R, R, R, 1)
    volume_t = vol_agg_reg_pallas(fm_t, cnt, params["reg_w"], params["reg_b"])

    # --- implicit_surface: trilinear lookup (glue) + fused SDF MLP --------
    pfeat_t = trilinear_sample_cm(volume_t, pts, R)              # (cvol, N)
    xt = jnp.concatenate([jnp.transpose(pts), pfeat_t], axis=0)  # (3+cvol, N)
    sdf = sdf_mlp_pallas(xt, params["w1"], params["b1"],
                         params["w2"], params["b2"])             # (N, 1)

    return {
        "sdf": sdf,
        "volume": volume_t.reshape(-1, R, R, R),   # channel-first (Cvol,R,R,R)
        "mask_volume": mask_volume,
        "features": feat,
        "match_features": match_feat,
    }


# ----------------------------------------------------------------------------
# Demo
# ----------------------------------------------------------------------------

if __name__ == "__main__":
    key = jax.random.PRNGKey(0)
    k_img, k_pts, k_par = jax.random.split(key, 3)

    V, H, W = 2, 16, 16
    imgs = jax.random.normal(k_img, (V, 3, H, W), jnp.float32)   # NCHW

    intr = jnp.array([[6.0, 0.0, 7.5],
                      [0.0, 6.0, 7.5],
                      [0.0, 0.0, 1.0]], jnp.float32)
    intrs = jnp.stack([intr, intr])

    def make_c2w(tx):
        c2w = jnp.eye(4, dtype=jnp.float32)
        c2w = c2w.at[0, 3].set(tx)
        c2w = c2w.at[2, 3].set(-2.5)
        return c2w

    c2ws = jnp.stack([make_c2w(0.0), make_c2w(0.3)])
    pts = jax.random.uniform(k_pts, (128, 3), jnp.float32, minval=-1.0, maxval=1.0)

    params = init_gens_params(k_par)
    ipts = {"imgs": imgs, "intrs": intrs, "c2ws": c2ws, "pts": pts}

    # conv_rows_target=8 exercises the halo row-tiling path at demo size
    # (rows=8, 2 row tiles per view -> conv grid of 4 steps).
    outputs = gens_forward(params, "train", ipts, cos_anneal_ratio=1.0,
                           step=None, conv_rows_target=8)
    jax.block_until_ready(outputs)

    assert outputs["sdf"].shape == (128, 1)
    assert outputs["volume"].shape == (16, 8, 8, 8)
    assert outputs["mask_volume"].shape == (8, 8, 8, 1)
    assert outputs["features"].shape == (V, H, W, 16)
    assert outputs["match_features"].shape == (V, H, W, 16)
    assert bool(jnp.all(jnp.isfinite(outputs["sdf"])))
    assert bool(jnp.all(jnp.isfinite(outputs["volume"])))
    print("KERNEL_OK")
</pallas_src>

<mosaic_0001>
module attributes {stable_mosaic.version = 11 : i64} {
  func.func @_conv3x3_dual_kernel(%arg0: i32, %arg1: memref<1x10x18x3xbf16, #tpu.memory_space<vmem>>, %arg2: memref<27x32xbf16, #tpu.memory_space<vmem>>, %arg3: memref<1x32xf32, #tpu.memory_space<vmem>>, %arg4: memref<1x128x32xf32, #tpu.memory_space<vmem>>) attributes {dimension_semantics = [#tpu.dimension_semantics<parallel>], iteration_bounds = array<i64: 4>, scalar_prefetch = 0 : i64, scratch_operands = 0 : i64, tpu.core_type = #tpu.core_type<tc>, window_params = [{transform_indices = @transform_0, window_bounds = array<i64: 1, 10, 18, 3>}, {pipeline_mode = #tpu.pipeline_mode<synchronous>, transform_indices = @transform_1, window_bounds = array<i64: 27, 32>}, {pipeline_mode = #tpu.pipeline_mode<synchronous>, transform_indices = @transform_2, window_bounds = array<i64: 1, 32>}, {transform_indices = @transform_3, window_bounds = array<i64: 1, 128, 32>}]} {
    %c0 = arith.constant 0 : index
    %c0_0 = arith.constant 0 : index
    %c0_1 = arith.constant 0 : index
    %c0_2 = arith.constant 0 : index
    %0 = vector.load %arg1[%c0, %c0_0, %c0_1, %c0_2] : memref<1x10x18x3xbf16, #tpu.memory_space<vmem>>, vector<1x10x18x3xbf16>
    %1 = vector.shape_cast %0 : vector<1x10x18x3xbf16> to vector<10x18x3xbf16>
    %2 = arith.extf %1 : vector<10x18x3xbf16> to vector<10x18x3xf32>
    %3 = vector.extract_strided_slice %2 {offsets = [0, 0, 0], sizes = [8, 16, 3], strides = [1, 1, 1]} : vector<10x18x3xf32> to vector<8x16x3xf32>
    %4 = vector.shape_cast %3 : vector<8x16x3xf32> to vector<128x3xf32>
    %5 = vector.extract_strided_slice %2 {offsets = [0, 1, 0], sizes = [8, 16, 3], strides = [1, 1, 1]} : vector<10x18x3xf32> to vector<8x16x3xf32>
    %6 = vector.shape_cast %5 : vector<8x16x3xf32> to vector<128x3xf32>
    %7 = vector.extract_strided_slice %2 {offsets = [0, 2, 0], sizes = [8, 16, 3], strides = [1, 1, 1]} : vector<10x18x3xf32> to vector<8x16x3xf32>
    %8 = vector.shape_cast %7 : vector<8x16x3xf32> to vector<128x3xf32>
    %9 = vector.extract_strided_slice %2 {offsets = [1, 0, 0], sizes = [8, 16, 3], strides = [1, 1, 1]} : vector<10x18x3xf32> to vector<8x16x3xf32>
    %10 = vector.shape_cast %9 : vector<8x16x3xf32> to vector<128x3xf32>
    %11 = vector.extract_strided_slice %2 {offsets = [1, 1, 0], sizes = [8, 16, 3], strides = [1, 1, 1]} : vector<10x18x3xf32> to vector<8x16x3xf32>
    %12 = vector.shape_cast %11 : vector<8x16x3xf32> to vector<128x3xf32>
    %13 = vector.extract_strided_slice %2 {offsets = [1, 2, 0], sizes = [8, 16, 3], strides = [1, 1, 1]} : vector<10x18x3xf32> to vector<8x16x3xf32>
    %14 = vector.shape_cast %13 : vector<8x16x3xf32> to vector<128x3xf32>
    %15 = vector.extract_strided_slice %2 {offsets = [2, 0, 0], sizes = [8, 16, 3], strides = [1, 1, 1]} : vector<10x18x3xf32> to vector<8x16x3xf32>
    %16 = vector.shape_cast %15 : vector<8x16x3xf32> to vector<128x3xf32>
    %17 = vector.extract_strided_slice %2 {offsets = [2, 1, 0], sizes = [8, 16, 3], strides = [1, 1, 1]} : vector<10x18x3xf32> to vector<8x16x3xf32>
    %18 = vector.shape_cast %17 : vector<8x16x3xf32> to vector<128x3xf32>
    %19 = vector.extract_strided_slice %2 {offsets = [2, 2, 0], sizes = [8, 16, 3], strides = [1, 1, 1]} : vector<10x18x3xf32> to vector<8x16x3xf32>
    %20 = vector.shape_cast %19 : vector<8x16x3xf32> to vector<128x3xf32>
    %21 = tpu.concatenate %4, %6, %8, %10, %12, %14, %16, %18, %20 in 1 : vector<128x3xf32>, vector<128x3xf32>, vector<128x3xf32>, vector<128x3xf32>, vector<128x3xf32>, vector<128x3xf32>, vector<128x3xf32>, vector<128x3xf32>, vector<128x3xf32> -> vector<128x27xf32>
    %22 = arith.truncf %21 : vector<128x27xf32> to vector<128x27xbf16>
    %c0_3 = arith.constant 0 : index
    %c0_4 = arith.constant 0 : index
    %23 = vector.load %arg2[%c0_3, %c0_4] : memref<27x32xbf16, #tpu.memory_space<vmem>>, vector<27x32xbf16>
    %cst = arith.constant dense<0.000000e+00> : vector<128x32xf32>
    %24 = tpu.matmul %22, %23, %cst {dimension_numbers = #tpu.dot_dimension_numbers<[1], [0], [0], [1], [0, 0, 1, 1], [], []>} : vector<128x27xbf16>, vector<27x32xbf16>, vector<128x32xf32> -> vector<128x32xf32>
    %c0_5 = arith.constant 0 : index
    %c0_6 = arith.constant 0 : index
    %25 = vector.load %arg3[%c0_5, %c0_6] : memref<1x32xf32, #tpu.memory_space<vmem>>, vector<1x32xf32>
    %26 = vector.broadcast %25 : vector<1x32xf32> to vector<128x32xf32>
    %27 = arith.addf %24, %26 : vector<128x32xf32>
    %cst_7 = arith.constant 0.000000e+00 : f32
    %28 = vector.broadcast %cst_7 : f32 to vector<128x32xf32>
    %29 = arith.maximumf %27, %28 : vector<128x32xf32>
    %c0_8 = arith.constant 0 : index
    %c0_9 = arith.constant 0 : index
    %c0_10 = arith.constant 0 : index
    %30 = vector.load %arg4[%c0_8, %c0_9, %c0_10] : memref<1x128x32xf32, #tpu.memory_space<vmem>>, vector<1x128x32xf32>
    %31 = vector.shape_cast %30 : vector<1x128x32xf32> to vector<128x32xf32>
    %32 = vector.shape_cast %29 : vector<128x32xf32> to vector<1x128x32xf32>
    tpu.vector_store %arg4[%c0_8, %c0_9, %c0_10], %32 {strides = array<i32>} : memref<1x128x32xf32, #tpu.memory_space<vmem>>, vector<1x128x32xf32>,
    return
  }
  func.func @transform_0(%arg0: i32) -> (i32, i32, i32, i32) {
    %c0_i32 = arith.constant 0 : i32
    %c0_i32_0 = arith.constant 0 : i32
    %c0_i32_1 = arith.constant 0 : i32
    %c0_i32_2 = arith.constant 0 : i32
    return %arg0, %c0_i32, %c0_i32_0, %c0_i32_1 : i32, i32, i32, i32
  }
  func.func @transform_1(%arg0: i32) -> (i32, i32) {
    %c0_i32 = arith.constant 0 : i32
    %c0_i32_0 = arith.constant 0 : i32
    %c0_i32_1 = arith.constant 0 : i32
    return %c0_i32, %c0_i32_0 : i32, i32
  }
  func.func @transform_2(%arg0: i32) -> (i32, i32) {
    %c0_i32 = arith.constant 0 : i32
    %c0_i32_0 = arith.constant 0 : i32
    %c0_i32_1 = arith.constant 0 : i32
    return %c0_i32, %c0_i32_0 : i32, i32
  }
  func.func @transform_3(%arg0: i32) -> (i32, i32, i32) {
    %c0_i32 = arith.constant 0 : i32
    %c0_i32_0 = arith.constant 0 : i32
    %c0_i32_1 = arith.constant 0 : i32
    return %arg0, %c0_i32, %c0_i32_0 : i32, i32, i32
  }
}

</mosaic_0001>

<bundles_post_ra>
// kernel: tpu_custom_call.1
= control target key start
LH: loop header
LB: loop body
LE: loop exit
PB: predicated region body
PF: predicated region fallthrough
CT: control target
= control target key end

     0   :  { %s1514_s12 = smov 0   ;;  %s2183_s0 = inlined_call_operand.vmem [shape: bf16[4,10,18,3], index: 0, kind: input, shape index: {}]   ;;  %s2184_s1 = inlined_call_operand.vmem [shape: bf16[27,32], index: 1, kind: input, shape index: {}]   ;;  %s2185_s2 = inlined_call_operand.vmem [shape: f32[1,32], index: 2, kind: input, shape index: {}]   ;;  %s2186_s3 = inlined_call_operand.vmem [shape: f32[4,128,32], index: 3, kind: output, shape index: {}]  }
   0x1 LB: > { %s1079_s13 = sadd.s32 4294967295, %s1483_s12   ;;  %p1083_p0 = scmp.ge.s32.totalorder %s1483_s12, 1  ;;  %s1483_s12 = sphi %s1514_s12, %s13_s12  }
   0x2   : > { %p137_p1 = scmp.lt.s32.totalorder %s1483_s12, 5 }
   0x4   : > { %p138_p2 = pnand %p1083_p0, %p137_p1 }
   0x5   : > { %p161_p3 = scmp.lt.s32.totalorder (!%p138_p2), %s1079_s13, 3  ;;  %s1485_s18 = smov (!%p138_p2), 3  }
   0x6   : > { %141 = sbr.rel (%p138_p2) target bundleno = 453 (0x1c5), region = 32  ;;  %s1486_s19 = smov (!%p138_p2), 6  }
   0x7   : > { %s1487_s20 = smov (!%p138_p2), 9   ;;  %s1488_s21 = smov (!%p138_p2), 12  }
   0x8   : > { %s1489_s22 = smov (!%p138_p2), 15   ;;  %s1490_s23 = smov (!%p138_p2), 21  }
   0x9   : > { %s1491_s24 = smov (!%p138_p2), 18   ;;  %s1492_s25 = smov (!%p138_p2), 24  }
   0xb   : > { %s2188_s13 = smov (!%p161_p3, %s1079_s13), 3  ;;  %vm256_vm0 = vcmask 1046528   ;;  %vm297_vm1 = vcmask 1045504   ;;  %vm748_vm2 = vcmask 23552   ;;  %vm765_vm3 = vcmask 48128  }
   0xc   : > { %s1138_s14 = smul.u32 120, %s2188_s13  ;;  %vm782_vm4 = vcmask 72704   ;;  %vm799_vm5 = vcmask 97280   ;;  %vm936_vm6 = vcmask 1044480   ;;  %vm816_vm7 = vcmask 121856   ;;  %s1105_s7 = sshll.u32 %s2188_s13, 7 }
   0xd   : > { %vm833_vm8 = vcmask 146432   ;;  %vm850_vm9 = vcmask 171008   ;;  %vm867_vm10 = vcmask 195584   ;;  %vm911_vm11 = vcmask 220160   ;;  %s2131_s10 = scalar_lea.vmem %s2186_s3, %s1105_s7 }
   0xe   : > { %s1528_s17 = scalar_lea.vmem %s2183_s0, %s1138_s14  ;;  %vm1007_vm12 = vcmask 261120  }
   0xf   : > { %v1129_v0 = vld [vmem:[%s1528_s17 + $0x30] sm:$0xff]   ;;  %v1532_v1 = vld [vmem:[%s1528_s17 + $0x38] sm:$0x1]  ;;  %v1543_v7 = vld [vmem:[%s1528_s17 + $0x20] sm:$0x1] }
  0x10   : > { %v1128_v2 = vld [vmem:[%s1528_s17 + $0x18] sm:$0xff]   ;;  %v1535_v3 = vunpack.c.l.bf16 %v1129_v0  ;;  %v1537_v4 = vunpack.c.h.bf16 %v1129_v0  ;;  %v216_v5 = vunpack.c.l.bf16 %v1532_v1  ;;  %v1109_v8 = vld [vmem:[%s1528_s17] sm:$0xff]   ;;  %v1547_v9 = vld [vmem:[%s1528_s17 + $0x8] sm:$0x1]  ;;  %v210_v11 = vunpack.c.l.bf16 %v1543_v7 }
  0x11   : > { %v1540_v6 = vunpack.c.l.bf16 %v1128_v2  ;;  %v1549_v10 = vunpack.c.h.bf16 %v1128_v2  ;;  %v1552_v12 = vunpack.c.l.bf16 %v1109_v8  ;;  %v1554_v13 = vunpack.c.h.bf16 %v1109_v8  ;;  %v187_v14 = vld [vmem:[%s1528_s17 + $0x3c] sm:$0xff]   ;;  %v1568_v23 = vld [vmem:[%s1528_s17 + $0x44] sm:$0x1]  ;;  %v1581_v33 = vld [vmem:[%s1528_s17 + $0x2c] sm:$0x1] }
  0x12   : > { %v277_v15 = vrot.slane %v1535_v3, 1  ;;  %v278_v16 = vrot.slane %v1537_v4, 1  ;;  %v280_v17 = vrot.slane %v216_v5, 1  ;;  %v270_v20 = vrot.slane %v210_v11, 1  ;;  %v181_v28 = vld [vmem:[%s1528_s17 + $0x24] sm:$0xff]   ;;  %v175_v38 = vld [vmem:[%s1528_s17 + $0xc] sm:$0xff]  }
  0x13   : > { %v267_v18 = vrot.slane %v1540_v6, 1  ;;  %v268_v19 = vrot.slane %v1549_v10, 1  ;;  %v204_v21 = vunpack.c.l.bf16 %v1547_v9  ;;  %v257_v22 = vrot.slane %v1552_v12, 1  ;;  %v1599_v43 = vld [vmem:[%s1528_s17 + $0x14] sm:$0x1]  ;;  %v1130_v8 = vld [vmem:[%s1528_s17 + $0x48] sm:$0xff]  }
  0x14   : > { %v279_v24 = vsel %vm256_vm0, %v277_v15, %v278_v16  ;;  %v281_v25 = vsel %vm256_vm0, %v278_v16, %v280_v17  ;;  %v258_v26 = vrot.slane %v1554_v13, 1  ;;  %v1573_v27 = vunpack.c.l.bf16 %v187_v14  ;;  %v193_v52 = vld [vmem:[%s1528_s17 + $0x54] sm:$0xff]   ;;  %v1619_v57 = vld [vmem:[%s1528_s17 + $0x5c] sm:$0x1]  ;;  %v192_v17 = vld [vmem:[%s1528_s17 + $0x50] sm:$0x1] }
  0x15   : > { %v1576_v29 = vpack.i.bf16 %v281_v25, %v279_v24  ;;  %v269_v30 = vsel %vm256_vm0, %v267_v18, %v268_v19  ;;  %v271_v31 = vsel %vm256_vm0, %v268_v19, %v270_v20  ;;  %v260_v32 = vrot.slane %v204_v21, 1 }
  0x16   : > { %v1583_v34 = vpack.i.bf16 %v271_v31, %v269_v30  ;;  %v259_v35 = vsel %vm256_vm0, %v257_v22, %v258_v26  ;;  %v1586_v36 = vunpack.c.h.bf16 %v187_v14  ;;  %v219_v37 = vunpack.c.l.bf16 %v1568_v23 }
  0x17   : > { %1177 = vrot.lane.b32.xlu2 %v1576_v29, %s1485_s18  ;;  %v261_v39 = vsel %vm256_vm0, %v258_v26, %v260_v32  ;;  %v282_v40 = vrot.slane %v1573_v27, 1  ;;  %v1594_v41 = vunpack.c.l.bf16 %v181_v28  ;;  %v1596_v42 = vunpack.c.h.bf16 %v181_v28 }
  0x18   : > { %1167 = vrot.lane.b32.xlu1 %v1583_v34, %s1485_s18  ;;  %v1156_v44 = vpack.i.bf16 %v261_v39, %v259_v35  ;;  %v283_v45 = vrot.slane %v1586_v36, 1  ;;  %v285_v46 = vrot.slane %v219_v37, 1  ;;  %v213_v47 = vunpack.c.l.bf16 %v1581_v33 }
  0x19   : > { %v272_v48 = vrot.slane %v1594_v41, 1  ;;  %v273_v49 = vrot.slane %v1596_v42, 1  ;;  %v1609_v50 = vunpack.c.l.bf16 %v175_v38  ;;  %v1611_v51 = vunpack.c.h.bf16 %v175_v38 }
  0x1a   : > { %1157 = vrot.lane.b32.xlu0 %v1156_v44, %s1485_s18  ;;  %v284_v53 = vsel %vm256_vm0, %v282_v40, %v283_v45  ;;  %v286_v54 = vsel %vm256_vm0, %v283_v45, %v285_v46  ;;  %v275_v55 = vrot.slane %v213_v47, 1  ;;  %v207_v56 = vunpack.c.l.bf16 %v1599_v43 }
  0x1b   : > { %v1621_v58 = vpack.i.bf16 %v286_v54, %v284_v53  ;;  %v274_v59 = vsel %vm256_vm0, %v272_v48, %v273_v49  ;;  %v262_v60 = vrot.slane %v1609_v50, 1  ;;  %v263_v61 = vrot.slane %v1611_v51, 1 }
  0x1c   : > { %v276_v62 = vsel %vm256_vm0, %v273_v49, %v275_v55  ;;  %v265_v63 = vrot.slane %v207_v56, 1  ;;  %v1627_v0 = vunpack.c.l.bf16 %v193_v52  ;;  %v1629_v2 = vunpack.c.h.bf16 %v193_v52 }
  0x1d   : > { %v1632_v9 = vpack.i.bf16 %v276_v62, %v274_v59  ;;  %v264_v14 = vsel %vm256_vm0, %v262_v60, %v263_v61  ;;  %v225_v15 = vunpack.c.l.bf16 %v1619_v57  ;;  %v298_v16 = vrot.slane %v1552_v12, 2 }
  0x1e   : > { %v266_v18 = vsel %vm256_vm0, %v263_v61, %v265_v63  ;;  %v292_v19 = vrot.slane %v1627_v0, 1  ;;  %v293_v20 = vrot.slane %v1629_v2, 1  ;;  %v299_v22 = vrot.slane %v1554_v13, 2 }
  0x1f   : > { %1182 = vrot.lane.b32.xlu2 %v1621_v58, %s1485_s18  ;;  %v1644_v24 = vpack.i.bf16 %v266_v18, %v264_v14  ;;  %v295_v25 = vrot.slane %v225_v15, 1  ;;  %v301_v26 = vrot.slane %v204_v21, 2  ;;  %v1648_v28 = vunpack.c.l.bf16 %v1130_v8 }
  0x20   : > { %1172 = vrot.lane.b32.xlu1 %v1632_v9, %s1485_s18  ;;  %v294_v30 = vsel %vm256_vm0, %v292_v19, %v293_v20  ;;  %v300_v31 = vsel %vm297_vm1, %v298_v16, %v299_v22  ;;  %v1654_v32 = vunpack.c.h.bf16 %v1130_v8  ;;  %v222_v33 = vunpack.c.l.bf16 %v192_v17 }
  0x21   : > { %v296_v35 = vsel %vm256_vm0, %v293_v20, %v295_v25  ;;  %v302_v38 = vsel %vm297_vm1, %v299_v22, %v301_v26  ;;  %v287_v39 = vrot.slane %v1648_v28, 1  ;;  %v313_v45 = vrot.slane %v1594_v41, 2 }
  0x22   : > { %1162 = vrot.lane.b32.xlu0 %v1644_v24, %s1485_s18  ;;  %v288_v21 = vrot.slane %v1654_v32, 1  ;;  %v290_v40 = vrot.slane %v222_v33, 1  ;;  %v1662_v43 = vpack.i.bf16 %v296_v35, %v294_v30  ;;  %v1196_v44 = vpack.i.bf16 %v302_v38, %v300_v31 }
  0x23   : > { %v314_v49 = vrot.slane %v1596_v42, 2  ;;  %v316_v52 = vrot.slane %v213_v47, 2  ;;  %v308_v53 = vrot.slane %v1540_v6, 2  ;;  %v309_v54 = vrot.slane %v1549_v10, 2 }
  0x24   : > { %v289_v46 = vsel %vm256_vm0, %v287_v39, %v288_v21  ;;  %v291_v48 = vsel %vm256_vm0, %v288_v21, %v290_v40  ;;  %v311_v55 = vrot.slane %v210_v11, 2  ;;  %v303_v60 = vrot.slane %v1609_v50, 2 }
  0x25   : > { %v1672_v59 = vpack.i.bf16 %v291_v48, %v289_v46  ;;  %v304_v61 = vrot.slane %v1611_v51, 2  ;;  %v306_v62 = vrot.slane %v207_v56, 2  ;;  %v315_v47 = vsel %vm297_vm1, %v313_v45, %v314_v49 }
  0x26   : > { %v317_v63 = vsel %vm297_vm1, %v314_v49, %v316_v52  ;;  %v310_v7 = vsel %vm297_vm1, %v308_v53, %v309_v54  ;;  %v312_v11 = vsel %vm297_vm1, %v309_v54, %v311_v55  ;;  %v328_v17 = vrot.slane %v1648_v28, 2  ;;  %v1131_v55 = vld [vmem:[%s1528_s17 + $0x60] sm:$0xff]  }
  0x27   : > { %1197 = vrot.lane.b32.xlu2 %v1196_v44, %s1486_s19  ;;  %v1685_v8 = vpack.i.bf16 %v317_v63, %v315_v47  ;;  %v305_v14 = vsel %vm297_vm1, %v303_v60, %v304_v61  ;;  %v307_v56 = vsel %vm297_vm1, %v304_v61, %v306_v62  ;;  %v1689_v16 = vpack.i.bf16 %v312_v11, %v310_v7  ;;  %v198_v11 = vld [vmem:[%s1528_s17 + $0x68] sm:$0x1] }
  0x28   : > { %1192 = vrot.lane.b32.xlu1 %v1662_v43, %s1485_s18  ;;  %v329_v18 = vrot.slane %v1654_v32, 2  ;;  %v331_v19 = vrot.slane %v222_v33, 2  ;;  %v323_v20 = vrot.slane %v1573_v27, 2  ;;  %v324_v22 = vrot.slane %v1586_v36, 2 }
  0x29   : > { %v326_v25 = vrot.slane %v219_v37, 2  ;;  %v1697_v26 = vpack.i.bf16 %v307_v56, %v305_v14  ;;  %v318_v30 = vrot.slane %v1535_v3, 2  ;;  %v319_v31 = vrot.slane %v1537_v4, 2 }
  0x2a   : > { %1187 = vrot.lane.b32.xlu0 %v1672_v59, %s1485_s18  ;;  %v321_v35 = vrot.slane %v216_v5, 2  ;;  %v330_v33 = vsel %vm297_vm1, %v328_v17, %v329_v18  ;;  %v332_v23 = vsel %vm297_vm1, %v329_v18, %v331_v19  ;;  %v325_v37 = vsel %vm297_vm1, %v323_v20, %v324_v22 }
  0x2b   : > { %v327_v38 = vsel %vm297_vm1, %v324_v22, %v326_v25  ;;  %v1713_v39 = vpack.i.bf16 %v332_v23, %v330_v33  ;;  %v320_v21 = vsel %vm297_vm1, %v318_v30, %v319_v31  ;;  %v333_v44 = vrot.slane %v1627_v0, 2 }
  0x2c   : > { %v322_v1 = vsel %vm297_vm1, %v319_v31, %v321_v35  ;;  %v1717_v5 = vpack.i.bf16 %v327_v38, %v325_v37  ;;  %v334_v45 = vrot.slane %v1629_v2, 2  ;;  %v336_v46 = vrot.slane %v225_v15, 2 }
  0x2d   : > { %v1719_v40 = vpack.i.bf16 %v322_v1, %v320_v21  ;;  %v1241_v48 = vpack.i.bf16 %v1549_v10, %v1540_v6  ;;  %v1236_v53 = vpack.i.bf16 %v1611_v51, %v1609_v50  ;;  %v1743_v57 = vpack.i.bf16 %v1586_v36, %v1573_v27 }
  0x2e   : > { %v335_v49 = vsel %vm297_vm1, %v333_v44, %v334_v45  ;;  %v337_v52 = vsel %vm297_vm1, %v334_v45, %v336_v46  ;;  %v1251_v15 = vpack.i.bf16 %v1537_v4, %v1535_v3  ;;  %v1750_v60 = vpack.i.bf16 %v1596_v42, %v1594_v41  ;;  %v199_v46 = vld [vmem:[%s1528_s17 + $0x6c] sm:$0xff]  }
  0x2f   : > { %1212 = vrot.lane.b32.xlu2 %v1685_v8, %s1486_s19  ;;  %v1737_v54 = vpack.i.bf16 %v337_v52, %v335_v49  ;;  %v1126_v61 = vunpack.c.l.bf16 %v1131_v55  ;;  %v1127_v62 = vunpack.c.h.bf16 %v1131_v55  ;;  %v1756_v63 = vpack.i.bf16 %v1629_v2, %v1627_v0  ;;  %v201_v52 = vld [vmem:[%s1528_s17 + $0x74] sm:$0x1] }
  0x30   : > { %1207 = vrot.lane.b32.xlu1 %v1689_v16, %s1486_s19  ;;  %v1261_v7 = vpack.i.bf16 %v1654_v32, %v1648_v28  ;;  %v228_v14 = vunpack.c.l.bf16 %v198_v11 }
  0x31   : > { %v1271_v47 = vpack.i.bf16 %v1127_v62, %v1126_v61  ;;  %v347_v56 = vrot.slane %v1127_v62, 2  ;;  %v341_v18 = vrot.slane %v1126_v61, 1  ;;  %v342_v19 = vrot.slane %v1127_v62, 1 }
  0x32   : > { %1202 = vrot.lane.b32.xlu0 %v1697_v26, %s1486_s19  ;;  %v349_v17 = vrot.slane %v228_v14, 2  ;;  %v344_v20 = vrot.slane %v228_v14, 1 }
  0x33   : > { %v343_v35 = vsel %vm256_vm0, %v341_v18, %v342_v19 }
  0x34   : > { %v350_v25 = vsel %vm297_vm1, %v347_v56, %v349_v17  ;;  %v345_v33 = vsel %vm256_vm0, %v342_v19, %v344_v20 }
  0x37   : > { %1227 = vrot.lane.b32.xlu2 %v1713_v39, %s1486_s19 }
  0x38   : > { %1222 = vrot.lane.b32.xlu1 %v1717_v5, %s1486_s19 }
  0x3a   : > { %1217 = vrot.lane.b32.xlu0 %v1719_v40, %s1486_s19 }
  0x3f   : > { %1242 = vrot.lane.b32.xlu2 %v1241_v48, %s1487_s20 }
  0x40   : > { %1237 = vrot.lane.b32.xlu1 %v1236_v53, %s1487_s20  ;;  %v230_v53 = vunpack.c.h.bf16 %v199_v46 }
  0x42   : > { %1232 = vrot.lane.b32.xlu0 %v1737_v54, %s1486_s19 }
  0x47   : > { %1257 = vrot.lane.b32.xlu2 %v1743_v57, %s1487_s20 }
  0x48   : > { %1252 = vrot.lane.b32.xlu1 %v1251_v15, %s1487_s20 }
  0x4a   : > { %1247 = vrot.lane.b32.xlu0 %v1750_v60, %s1487_s20 }
  0x4f   : > { %1272 = vrot.lane.b32.xlu2 %v1271_v47, %s1487_s20 }
  0x50   : > { %1267 = vrot.lane.b32.xlu1 %v1756_v63, %s1487_s20 }
  0x52   : > { %1262 = vrot.lane.b32.xlu0 %v1261_v7, %s1487_s20 }
  0x57   : > { %1287 = vrot.lane.b32.xlu2 %v1632_v9, %s1488_s21 }
  0x58   : > { %1282 = vrot.lane.b32.xlu1 %v1583_v34, %s1488_s21 }
  0x5a   : > { %1277 = vrot.lane.b32.xlu0 %v1644_v24, %s1488_s21  ;;  %v346_v24 = vrot.slane %v1126_v61, 2 }
  0x5c   : > { %v348_v22 = vsel %vm297_vm1, %v346_v24, %v347_v56  ;;  %v355_v56 = vrot.slane %v230_v53, 1 }
  0x5d   : > { %v1346_v31 = vpack.i.bf16 %v350_v25, %v348_v22 }
  0x5f   : > { %1302 = vrot.lane.b32.xlu2 %v1672_v59, %s1488_s21 }
  0x60   : > { %1297 = vrot.lane.b32.xlu1 %v1621_v58, %s1488_s21 }
  0x62   : > { %1292 = vrot.lane.b32.xlu0 %v1576_v29, %s1488_s21 }
  0x67   : > { %1317 = vrot.lane.b32.xlu2 %v1737_v54, %s1489_s22 }
  0x68   : > { %1312 = vrot.lane.b32.xlu1 %v1717_v5, %s1489_s22 }
  0x6a   : > { %1307 = vrot.lane.b32.xlu0 %v1662_v43, %s1488_s21 }
  0x6f   : > { %1332 = vrot.lane.b32.xlu2 %v1672_v59, %s1490_s23  ;;  %v1336_v59 = vpack.i.bf16 %v345_v33, %v343_v35 }
  0x70   : > { %1327 = vrot.lane.b32.xlu1 %v1271_v47, %s1491_s24 }
  0x71   : > { %v1785_v30 = vpop.permute.xlu2 %1177 }
  0x72   : > { %1322 = vrot.lane.b32.xlu0 %v1261_v7, %s1491_s24 }
  0x77   : > { %1347 = vrot.lane.b32.xlu2 %v1346_v31, %s1492_s25 }
  0x78   : > { %1342 = vrot.lane.b32.xlu1 %v1713_v39, %s1492_s25 }
  0x79   : > { %v1793_v23 = vpop.permute.xlu2 %1182 }
  0x7a   : > { %1337 = vrot.lane.b32.xlu0 %v1336_v59, %s1490_s23 }
  0x7f   : > { %1362 = vrot.lane.b32.xlu2 %v1241_v48, %s1491_s24 }
  0x80   : > { %1357 = vrot.lane.b32.xlu1 %v1685_v8, %s1489_s22 }
  0x81   : > { %v1198_v37 = vpop.permute.xlu2 %1197 }
  0x82   : > { %1352 = vrot.lane.b32.xlu0 %v1697_v26, %s1489_s22  ;;  %v1200_v1 = vunpack.i.h.bf16 %v1198_v37  ;;  %v1199_v44 = vunpack.i.l.bf16 %v1198_v37  ;;  %v229_v26 = vunpack.c.l.bf16 %v199_v46 }
  0x84   : > { %v354_v24 = vrot.slane %v229_v26, 1  ;;  %v1411_v46 = vpack.i.bf16 %v230_v53, %v229_v26 }
  0x87   : > { %1377 = vrot.lane.b32.xlu2 %v1576_v29, %s1490_s23 }
  0x88   : > { %1372 = vrot.lane.b32.xlu1 %v1583_v34, %s1490_s23 }
  0x89   : > { %v1213_v38 = vpop.permute.xlu2 %1212 }
  0x8a   : > { %1367 = vrot.lane.b32.xlu0 %v1251_v15, %s1491_s24  ;;  %v1806_v21 = vpop.permute.xlu1 %1167  ;;  %v231_v15 = vunpack.c.l.bf16 %v201_v52  ;;  %v1214_v47 = vunpack.i.l.bf16 %v1213_v38 }
  0x8c   : > { %v1158_v45 = vpop.permute.xlu0 %1157  ;;  %v357_v17 = vrot.slane %v231_v15, 1 }
  0x8d   : > { %v1160_v48 = vunpack.i.h.bf16 %v1158_v45  ;;  %v1159_v49 = vunpack.i.l.bf16 %v1158_v45  ;;  %v362_v45 = vrot.slane %v231_v15, 2 }
  0x8f   : > { %v750_v29 = vsel %vm748_vm2, %v1554_v13, %v1160_v48  ;;  %v749_v34 = vsel %vm748_vm2, %v1552_v12, %v1159_v49  ;;  %1392 = vrot.lane.b32.xlu2 %v1336_v59, %s1488_s21  ;;  %v1215_v13 = vunpack.i.h.bf16 %v1213_v38 }
  0x90   : > { %1387 = vrot.lane.b32.xlu1 %v1719_v40, %s1492_s25  ;;  %v1818_v55 = vsel %vm765_vm3, %v749_v34, %v1199_v44  ;;  %v1821_v61 = vsel %vm765_vm3, %v750_v29, %v1200_v1  ;;  %v359_v44 = vrot.slane %v229_v26, 2 }
  0x91   : > { %v1823_v62 = vpop.permute.xlu2 %1227 }
  0x92   : > { %1382 = vrot.lane.b32.xlu0 %v1689_v16, %s1492_s25  ;;  %v1173_v12 = vpop.permute.xlu1 %1172 }
  0x93   : > { %v1175_v7 = vunpack.i.h.bf16 %v1173_v12  ;;  %v1174_v11 = vunpack.i.l.bf16 %v1173_v12 }
  0x94   : > { %v1163_v14 = vpop.permute.xlu0 %1162 }
  0x95   : > { %v756_v18 = vsel %vm748_vm2, %v1596_v42, %v1175_v7  ;;  %v755_v19 = vsel %vm748_vm2, %v1594_v41, %v1174_v11  ;;  %v1165_v20 = vunpack.i.h.bf16 %v1163_v14  ;;  %v1164_v22 = vunpack.i.l.bf16 %v1163_v14 }
  0x96   : > { %v1832_v25 = vsel %vm765_vm3, %v755_v19, %v1214_v47  ;;  %v1835_v35 = vsel %vm765_vm3, %v756_v18, %v1215_v13  ;;  %v356_v41 = vsel %vm256_vm0, %v354_v24, %v355_v56  ;;  %v358_v42 = vsel %vm256_vm0, %v355_v56, %v357_v17 }
  0x97   : > { %v752_v33 = vsel %vm748_vm2, %v1611_v51, %v1165_v20  ;;  %v751_v59 = vsel %vm748_vm2, %v1609_v50, %v1164_v22  ;;  %1407 = vrot.lane.b32.xlu2 %v1756_v63, %s1491_s24  ;;  %v1421_v1 = vpack.i.bf16 %v358_v42, %v356_v41  ;;  %v360_v50 = vrot.slane %v230_v53, 2 }
  0x98   : > { %1402 = vrot.lane.b32.xlu1 %v1346_v31, %s1489_s22  ;;  %v1170_v63 = vunpack.i.h.bf16 %v1806_v21  ;;  %v1169_v31 = vunpack.i.l.bf16 %v1806_v21 }
  0x99   : > { %v1243_v37 = vpop.permute.xlu2 %1242  ;;  %v363_v48 = vsel %vm297_vm1, %v360_v50, %v362_v45 }
  0x9a   : > { %1397 = vrot.lane.b32.xlu0 %v1713_v39, %s1489_s22  ;;  %v1848_v38 = vpop.permute.xlu1 %1192  ;;  %v361_v39 = vsel %vm297_vm1, %v359_v44, %v360_v50  ;;  %v754_v53 = vsel %vm748_vm2, %v1549_v10, %v1170_v63  ;;  %v753_v21 = vsel %vm748_vm2, %v1540_v6, %v1169_v31  ;;  %v1244_v15 = vunpack.i.l.bf16 %v1243_v37 }
  0x9b   : > { %v1431_v26 = vpack.i.bf16 %v363_v48, %v361_v39  ;;  %v1185_v10 = vunpack.i.h.bf16 %v1793_v23  ;;  %v1184_v6 = vunpack.i.l.bf16 %v1793_v23  ;;  %v1194_v42 = vunpack.i.l.bf16 %v1848_v38 }
  0x9c   : > { %v1850_v51 = vpop.permute.xlu0 %1187 }
  0x9d   : > { %v759_v23 = vsel %vm748_vm2, %v1573_v27, %v1184_v6  ;;  %v763_v63 = vsel %vm748_vm2, %v1627_v0, %v1194_v42  ;;  %v1106_v42 = vld [vmem:[%s2184_s1] sm:$0xff] }
  0x9f   : > { %1422 = vrot.lane.b32.xlu2 %v1421_v1, %s1490_s23 }
  0xa0   : > { %1417 = vrot.lane.b32.xlu1 %v1662_v43, %s1490_s23  ;;  %v1245_v43 = vunpack.i.h.bf16 %v1243_v37 }
  0xa1   : > { %v1859_v49 = vpop.permute.xlu2 %1257 }
  0xa2   : > { %1412 = vrot.lane.b32.xlu0 %v1411_v46, %s1491_s24  ;;  %v1208_v52 = vpop.permute.xlu1 %1207 }
  0xa3   : > { %v1210_v29 = vunpack.i.h.bf16 %v1208_v52  ;;  %v1209_v34 = vunpack.i.l.bf16 %v1208_v52 }
  0xa4   : > { %v1203_v13 = vpop.permute.xlu0 %1202 }
  0xa5   : > { %v770_v47 = vsel %vm765_vm3, %v753_v21, %v1209_v34  ;;  %v771_v12 = vsel %vm765_vm3, %v754_v53, %v1210_v29  ;;  %v1205_v7 = vunpack.i.h.bf16 %v1203_v13  ;;  %v1204_v11 = vunpack.i.l.bf16 %v1203_v13 }
  0xa7   : > { %v768_v14 = vsel %vm765_vm3, %v751_v59, %v1204_v11  ;;  %v769_v24 = vsel %vm765_vm3, %v752_v33, %v1205_v7  ;;  %1437 = vrot.lane.b32.xlu2 %v1689_v16, %s1489_s22  ;;  %v760_v16 = vsel %vm748_vm2, %v1586_v36, %v1185_v10 }
  0xa8   : > { %1432 = vrot.lane.b32.xlu1 %v1431_v26, %s1492_s25  ;;  %v1876_v56 = vsel %vm782_vm4, %v768_v14, %v1244_v15  ;;  %v1879_v17 = vsel %vm782_vm4, %v769_v24, %v1245_v43  ;;  %v1493_v24 = vmov 65535  }
  0xa9   : > { %v1273_v18 = vpop.permute.xlu2 %1272  ;;  %v937_v10 = vsel %vm936_vm6, 4294967295, %v1493_v24 }
  0xaa   : > { %1427 = vrot.lane.b32.xlu0 %v1737_v54, %s1492_s25  ;;  %v1223_v19 = vpop.permute.xlu1 %1222  ;;  %v1195_v54 = vunpack.i.h.bf16 %v1848_v38  ;;  %v1275_v44 = vunpack.i.h.bf16 %v1273_v18  ;;  %v1274_v50 = vunpack.i.l.bf16 %v1273_v18  ;;  %v938_v6 = vsel %vm297_vm1, %v937_v10, 0 }
  0xab   : > { %v1225_v20 = vunpack.i.h.bf16 %v1223_v19  ;;  %v1224_v22 = vunpack.i.l.bf16 %v1223_v19 }
  0xac   : > { %v1887_v33 = vpop.permute.xlu0 %1217 }
  0xad   : > { %v777_v59 = vsel %vm765_vm3, %v760_v16, %v1225_v20  ;;  %v776_v41 = vsel %vm765_vm3, %v759_v23, %v1224_v22 }
  0xaf   : > { %1452 = vrot.lane.b32.xlu2 %v1743_v57, %s1491_s24 }
  0xb0   : > { %1447 = vrot.lane.b32.xlu1 %v1750_v60, %s1491_s24 }
  0xb1   : > { %v1899_v1 = vpop.permute.xlu2 %1287 }
  0xb2   : > { %1442 = vrot.lane.b32.xlu0 %v1719_v40, %s1489_s22  ;;  %v1238_v27 = vpop.permute.xlu1 %1237  ;;  %v764_v40 = vsel %vm748_vm2, %v1629_v2, %v1195_v54 }
  0xb3   : > { %v1240_v36 = vunpack.i.h.bf16 %v1238_v27  ;;  %v1239_v37 = vunpack.i.l.bf16 %v1238_v27 }
  0xb4   : > { %v1233_v45 = vpop.permute.xlu0 %1232 }
  0xb5   : > { %v1903_v57 = vsel %vm782_vm4, %v1818_v55, %v1239_v37  ;;  %v1907_v60 = vsel %vm782_vm4, %v1821_v61, %v1240_v36  ;;  %v1235_v38 = vunpack.i.h.bf16 %v1233_v45  ;;  %v1234_v46 = vunpack.i.l.bf16 %v1233_v45 }
  0xb7   : > { %v781_v31 = vsel %vm765_vm3, %v764_v40, %v1235_v38  ;;  %v780_v39 = vsel %vm765_vm3, %v763_v63, %v1234_v46  ;;  %1467 = vrot.lane.b32.xlu2 %v1685_v8, %s1492_s25  ;;  %v1179_v38 = vunpack.i.l.bf16 %v1785_v30  ;;  %v1190_v46 = vunpack.i.h.bf16 %v1850_v51 }
  0xb8   : > { %1462 = vrot.lane.b32.xlu1 %v1621_v58, %s1490_s23  ;;  %v1920_v55 = vsel %vm782_vm4, %v780_v39, %v1274_v50  ;;  %v1923_v61 = vsel %vm782_vm4, %v781_v31, %v1275_v44  ;;  %v1189_v40 = vunpack.i.l.bf16 %v1850_v51  ;;  %v1180_v31 = vunpack.i.h.bf16 %v1785_v30 }
  0xb9   : > { %v1303_v58 = vpop.permute.xlu2 %1302  ;;  %v1219_v39 = vunpack.i.l.bf16 %v1887_v33  ;;  %v1259_v30 = vunpack.i.l.bf16 %v1859_v49 }
  0xba   : > { %1457 = vrot.lane.b32.xlu0 %v1632_v9, %s1490_s23  ;;  %v1253_v0 = vpop.permute.xlu1 %1252  ;;  %v1305_v43 = vunpack.i.h.bf16 %v1303_v58  ;;  %v1304_v15 = vunpack.i.l.bf16 %v1303_v58  ;;  %v761_v51 = vsel %vm748_vm2, %v1648_v28, %v1189_v40  ;;  %v758_v58 = vsel %vm748_vm2, %v1537_v4, %v1180_v31 }
  0xbb   : > { %v1255_v2 = vunpack.i.h.bf16 %v1253_v0  ;;  %v1254_v48 = vunpack.i.l.bf16 %v1253_v0 }
  0xbc   : > { %v1248_v52 = vpop.permute.xlu0 %1247 }
  0xbd   : > { %v789_v29 = vsel %vm782_vm4, %v1832_v25, %v1254_v48  ;;  %v790_v8 = vsel %vm782_vm4, %v1835_v35, %v1255_v2  ;;  %v1250_v34 = vunpack.i.h.bf16 %v1248_v52  ;;  %v1249_v26 = vunpack.i.l.bf16 %v1248_v52  ;;  %v1093_v35 = vld [vmem:[%s2184_s1 + $0x8] sm:$0xf] }
  0xbe   : > { %v1220_v2 = vunpack.i.h.bf16 %v1887_v33  ;;  %v1230_v48 = vunpack.i.h.bf16 %v1823_v62  ;;  %v1229_v52 = vunpack.i.l.bf16 %v1823_v62  ;;  %v1260_v33 = vunpack.i.h.bf16 %v1859_v49 }
  0xbf   : > { %v1932_v53 = vsel %vm782_vm4, %v771_v12, %v1250_v34  ;;  %v1935_v21 = vsel %vm782_vm4, %v770_v47, %v1249_v26  ;;  %v1107_v47 = vld [vmem:[%s2184_s1 + $0x8] sm:$0x30] }
  0xc0   : > { %v1094_v14 = vor.u32 %v1107_v47, %v1093_v35  ;;  %v775_v62 = vsel %vm765_vm3, %v758_v58, %v1220_v2 }
  0xc1   : > { %v1947_v12 = vpop.permute.xlu2 %1317  ;;  %v792_v4 = vsel %vm782_vm4, %v775_v62, %v1260_v33 }
  0xc2   : > { %1472 = vrot.lane.b32.xlu0 %v1717_v5, %s1492_s25  ;;  %v1939_v9 = vpop.permute.xlu1 %1267  ;;  %v940_v20 = vand.u32 %v1094_v14, %v938_v6  ;;  %v1319_v6 = vunpack.i.l.bf16 %v1947_v12 }
  0xc3   : > { %v1269_v26 = vunpack.i.l.bf16 %v1939_v9  ;;  %v1270_v28 = vunpack.i.h.bf16 %v1939_v9  ;;  %v1320_v9 = vunpack.i.h.bf16 %v1947_v12 }
  0xc4   : > { %v1263_v25 = vpop.permute.xlu0 %1262  ;;  %1133 = vmatpush.bf16.msra.mxu2 %v940_v20  ;;  %1134 = vmatpush.bf16.msra.mxu3 %v940_v20 }
  0xc5   : > { %v1265_v13 = vunpack.i.h.bf16 %v1263_v25  ;;  %v1264_v7 = vunpack.i.l.bf16 %v1263_v25  ;;  %948 = vmatpush.bf16.msra.mxu0 %v940_v20  ;;  %1132 = vmatpush.bf16.msra.mxu1 %v940_v20 }
  0xc7   : > { %v794_v5 = vsel %vm782_vm4, %v777_v59, %v1265_v13  ;;  %v793_v11 = vsel %vm782_vm4, %v776_v41, %v1264_v7 }
  0xc8   : > { %v1953_v18 = vsel %vm799_vm5, %v793_v11, %v1304_v15  ;;  %v1956_v19 = vsel %vm799_vm5, %v794_v5, %v1305_v43  ;;  %1136 = vmatpush.bf16.msra.mxu2 %v1106_v42  ;;  %1137 = vmatpush.bf16.msra.mxu3 %v1106_v42 }
  0xc9   : > { %949 = vmatpush.bf16.msra.mxu0 %v1106_v42  ;;  %1135 = vmatpush.bf16.msra.mxu1 %v1106_v42  ;;  %v1971_v27 = vpop.permute.xlu2 %1332 }
  0xca   : > { %v1283_v22 = vpop.permute.xlu1 %1282  ;;  %v1334_v42 = vunpack.i.l.bf16 %v1971_v27 }
  0xcb   : > { %v1285_v16 = vunpack.i.h.bf16 %v1283_v22  ;;  %v1284_v23 = vunpack.i.l.bf16 %v1283_v22 }
  0xcc   : > { %v1958_v59 = vpop.permute.xlu0 %1277 }
  0xcd   : > { %v1962_v41 = vsel %vm799_vm5, %v1876_v56, %v1284_v23  ;;  %v1966_v54 = vsel %vm799_vm5, %v1879_v17, %v1285_v16  ;;  %v1335_v23 = vunpack.i.h.bf16 %v1971_v27 }
  0xd1   : > { %v1982_v63 = vpop.permute.xlu2 %1347 }
  0xd2   : > { %v1298_v36 = vpop.permute.xlu1 %1297  ;;  %v1350_v31 = vunpack.i.h.bf16 %v1982_v63  ;;  %v1349_v27 = vunpack.i.l.bf16 %v1982_v63 }
  0xd3   : > { %v1300_v15 = vunpack.i.h.bf16 %v1298_v36  ;;  %v1299_v25 = vunpack.i.l.bf16 %v1298_v36 }
  0xd4   : > { %v1293_v37 = vpop.permute.xlu0 %1292 }
  0xd5   : > { %v1295_v44 = vunpack.i.h.bf16 %v1293_v37  ;;  %v1294_v50 = vunpack.i.l.bf16 %v1293_v37  ;;  %v809_v16 = vsel %vm799_vm5, %v792_v4, %v1300_v15 }
  0xd7   : > { %v1974_v56 = vsel %vm799_vm5, %v790_v8, %v1295_v44  ;;  %v1977_v17 = vsel %vm799_vm5, %v789_v29, %v1294_v50  ;;  %v757_v29 = vsel %vm748_vm2, %v1535_v3, %v1179_v38  ;;  %v762_v8 = vsel %vm748_vm2, %v1654_v32, %v1190_v46 }
  0xd8   : > { %v774_v34 = vsel %vm765_vm3, %v757_v29, %v1219_v39  ;;  %v778_v3 = vsel %vm765_vm3, %v761_v51, %v1229_v52  ;;  %v779_v32 = vsel %vm765_vm3, %v762_v8, %v1230_v48 }
  0xd9   : > { %v791_v13 = vsel %vm782_vm4, %v774_v34, %v1259_v30  ;;  %v2007_v47 = vpop.permute.xlu2 %1362  ;;  %v795_v10 = vsel %vm782_vm4, %v778_v3, %v1269_v26  ;;  %v796_v20 = vsel %vm782_vm4, %v779_v32, %v1270_v28 }
  0xda   : > { %v1313_v45 = vpop.permute.xlu1 %1312  ;;  %v808_v22 = vsel %vm799_vm5, %v791_v13, %v1299_v25 }
  0xdb   : > { %v1315_v49 = vunpack.i.h.bf16 %v1313_v45  ;;  %v1314_v7 = vunpack.i.l.bf16 %v1313_v45 }
  0xdc   : > { %v1308_v0 = vpop.permute.xlu0 %1307 }
  0xdd   : > { %v1310_v5 = vunpack.i.h.bf16 %v1308_v0  ;;  %v1309_v11 = vunpack.i.l.bf16 %v1308_v0  ;;  %v825_v36 = vsel %vm816_vm7, %v808_v22, %v1314_v7  ;;  %v826_v37 = vsel %vm816_vm7, %v809_v16, %v1315_v49 }
  0xde   : > { %v1290_v49 = vunpack.i.h.bf16 %v1899_v1  ;;  %v1289_v7 = vunpack.i.l.bf16 %v1899_v1 }
  0xdf   : > { %v812_v44 = vsel %vm799_vm5, %v795_v10, %v1309_v11  ;;  %v813_v12 = vsel %vm799_vm5, %v796_v20, %v1310_v5  ;;  %v1280_v5 = vunpack.i.h.bf16 %v1958_v59  ;;  %v1279_v11 = vunpack.i.l.bf16 %v1958_v59 }
  0xe0   : > { %v829_v2 = vsel %vm816_vm7, %v812_v44, %v1319_v6  ;;  %v830_v48 = vsel %vm816_vm7, %v813_v12, %v1320_v9  ;;  %v804_v16 = vsel %vm799_vm5, %v1935_v21, %v1289_v7  ;;  %v1365_v59 = vunpack.i.h.bf16 %v2007_v47 }
  0xe1   : > { %v1378_v26 = vpop.permute.xlu2 %1377  ;;  %v800_v1 = vsel %vm799_vm5, %v1903_v57, %v1279_v11 }
  0xe2   : > { %v1328_v43 = vpop.permute.xlu1 %1327  ;;  %v1379_v44 = vunpack.i.l.bf16 %v1378_v26 }
  0xe3   : > { %v1330_v38 = vunpack.i.h.bf16 %v1328_v43  ;;  %v1329_v46 = vunpack.i.l.bf16 %v1328_v43 }
  0xe4   : > { %v1323_v35 = vpop.permute.xlu0 %1322 }
  0xe5   : > { %v1325_v14 = vunpack.i.h.bf16 %v1323_v35  ;;  %v1324_v24 = vunpack.i.l.bf16 %v1323_v35  ;;  %v846_v34 = vsel %vm833_vm8, %v829_v2, %v1329_v46  ;;  %v847_v63 = vsel %vm833_vm8, %v830_v48, %v1330_v38 }
  0xe7   : > { %v842_v50 = vsel %vm833_vm8, %v825_v36, %v1324_v24  ;;  %v843_v45 = vsel %vm833_vm8, %v826_v37, %v1325_v14  ;;  %v1364_v36 = vunpack.i.l.bf16 %v2007_v47  ;;  %v1380_v37 = vunpack.i.h.bf16 %v1378_v26 }
  0xe8   : > { %v859_v29 = vsel %vm850_vm9, %v842_v50, %v1334_v42  ;;  %v860_v8 = vsel %vm850_vm9, %v843_v45, %v1335_v23  ;;  %v805_v23 = vsel %vm799_vm5, %v1932_v53, %v1290_v49  ;;  %v801_v42 = vsel %vm799_vm5, %v1907_v60, %v1280_v5 }
  0xe9   : > { %v2039_v4 = vpop.permute.xlu2 %1392 }
  0xea   : > { %v1343_v40 = vpop.permute.xlu1 %1342 }
  0xeb   : > { %v1345_v39 = vunpack.i.h.bf16 %v1343_v40  ;;  %v1344_v0 = vunpack.i.l.bf16 %v1343_v40 }
  0xec   : > { %v1338_v52 = vpop.permute.xlu0 %1337 }
  0xed   : > { %v1340_v51 = vunpack.i.h.bf16 %v1338_v52  ;;  %v1339_v30 = vunpack.i.l.bf16 %v1338_v52  ;;  %v876_v58 = vsel %vm867_vm10, %v859_v29, %v1344_v0  ;;  %v877_v33 = vsel %vm867_vm10, %v860_v8, %v1345_v39 }
  0xee   : > { %v888_v62 = vpack.c.bf16 %v877_v33, %v876_v58 }
  0xef   : > { %v863_v3 = vsel %vm850_vm9, %v846_v34, %v1339_v30  ;;  %v864_v32 = vsel %vm850_vm9, %v847_v63, %v1340_v51 }
  0xf0   : > { %1099 = vmatmul.msk.bf16.vlgmr.msra.gmra.mxu2 %vm911_vm11, %v888_v62  ;;  %v880_v43 = vsel %vm867_vm10, %v863_v3, %v1349_v27  ;;  %v881_v28 = vsel %vm867_vm10, %v864_v32, %v1350_v31 }
  0xf1   : > { %v890_v15 = vpack.c.bf16 %v881_v28, %v880_v43  ;;  %v1408_v40 = vpop.permute.xlu2 %1407  ;;  %v1395_v28 = vunpack.i.h.bf16 %v2039_v4 }
  0xf2   : > { %v1358_v25 = vpop.permute.xlu1 %1357 }
  0xf3   : > { %1101 = vmatmul.msk.bf16.vlgmr.msra.gmra.mxu3 %vm911_vm11, %v890_v15  ;;  %v1360_v14 = vunpack.i.h.bf16 %v1358_v25  ;;  %v1359_v24 = vunpack.i.l.bf16 %v1358_v25  ;;  %v1394_v15 = vunpack.i.l.bf16 %v2039_v4 }
  0xf4   : > { %v1353_v13 = vpop.permute.xlu0 %1352 }
  0xf5   : > { %v1355_v9 = vunpack.i.h.bf16 %v1353_v13  ;;  %v1354_v6 = vunpack.i.l.bf16 %v1353_v13  ;;  %v821_v12 = vsel %vm816_vm7, %v804_v16, %v1359_v24  ;;  %v822_v50 = vsel %vm816_vm7, %v805_v23, %v1360_v14 }
  0xf6   : > { %v814_v14 = vsel %vm799_vm5, %v1920_v55, %v1394_v15  ;;  %v815_v24 = vsel %vm799_vm5, %v1923_v61, %v1395_v28 }
  0xf7   : > { %v817_v21 = vsel %vm816_vm7, %v800_v1, %v1354_v6  ;;  %v818_v53 = vsel %vm816_vm7, %v801_v42, %v1355_v9  ;;  %v1409_v9 = vunpack.i.l.bf16 %v1408_v40 }
  0xf8   : > { %v834_v27 = vsel %vm833_vm8, %v817_v21, %v1364_v36  ;;  %v835_v39 = vsel %vm833_vm8, %v818_v53, %v1365_v59 }
  0xf9   : > { %v1423_v32 = vpop.permute.xlu2 %1422 }
  0xfa   : > { %v1373_v35 = vpop.permute.xlu1 %1372 }
  0xfb   : > { %v1375_v38 = vunpack.i.h.bf16 %v1373_v35  ;;  %v1374_v60 = vunpack.i.l.bf16 %v1373_v35 }
  0xfc   : > { %v1368_v10 = vpop.permute.xlu0 %1367 }
  0xfd   : > { %v1370_v20 = vunpack.i.h.bf16 %v1368_v10  ;;  %v1369_v22 = vunpack.i.l.bf16 %v1368_v10  ;;  %v851_v30 = vsel %vm850_vm9, %v834_v27, %v1374_v60  ;;  %v852_v58 = vsel %vm850_vm9, %v835_v39, %v1375_v38 }
  0xfe   : > { %v1410_v10 = vunpack.i.h.bf16 %v1408_v40 }
  0xff   : > { %v838_v45 = vsel %vm833_vm8, %v821_v12, %v1369_v22  ;;  %v839_v57 = vsel %vm833_vm8, %v822_v50, %v1370_v20  ;;  %v1425_v20 = vunpack.i.h.bf16 %v1423_v32  ;;  %v1424_v22 = vunpack.i.l.bf16 %v1423_v32 }
 0x100   : > { %v855_v2 = vsel %vm850_vm9, %v838_v45, %v1379_v44  ;;  %v856_v48 = vsel %vm850_vm9, %v839_v57, %v1380_v37 }
 0x101   : > { %v1438_v6 = vpop.permute.xlu2 %1437 }
 0x102   : > { %v1388_v46 = vpop.permute.xlu1 %1387 }
 0x103   : > { %v1390_v31 = vunpack.i.h.bf16 %v1388_v46  ;;  %v1389_v47 = vunpack.i.l.bf16 %v1388_v46 }
 0x104   : > { %v1383_v0 = vpop.permute.xlu0 %1382 }
 0x105   : > { %v1385_v52 = vunpack.i.h.bf16 %v1383_v0  ;;  %v1384_v29 = vunpack.i.l.bf16 %v1383_v0  ;;  %v872_v8 = vsel %vm867_vm10, %v855_v2, %v1389_v47  ;;  %v873_v51 = vsel %vm867_vm10, %v856_v48, %v1390_v31 }
 0x106   : > { %v886_v33 = vpack.c.bf16 %v873_v51, %v872_v8  ;;  %v1440_v48 = vunpack.i.h.bf16 %v1438_v6 }
 0x107   : > { %v868_v34 = vsel %vm867_vm10, %v851_v30, %v1384_v29  ;;  %v869_v63 = vsel %vm867_vm10, %v852_v58, %v1385_v52  ;;  %v1439_v52 = vunpack.i.l.bf16 %v1438_v6 }
 0x108   : > { %v884_v62 = vpack.c.bf16 %v869_v63, %v868_v34  ;;  %1097 = vmatmul.msk.bf16.vlgmr.msra.gmra.mxu1 %vm911_vm11, %v886_v33  ;;  %v820_v63 = vsel %vm816_vm7, %v1966_v54, %v1440_v48 }
 0x109   : > { %v1453_v27 = vpop.permute.xlu2 %1452  ;;  %v819_v34 = vsel %vm816_vm7, %v1962_v41, %v1439_v52 }
 0x10a   : > { %1095 = vmatmul.msk.bf16.vlgmr.msra.gmra.mxu0 %vm911_vm11, %v884_v62  ;;  %v1403_v26 = vpop.permute.xlu1 %1402 }
 0x10b   : > { %v1405_v25 = vunpack.i.h.bf16 %v1403_v26  ;;  %v1404_v13 = vunpack.i.l.bf16 %v1403_v26 }
 0x10c   : > { %v1398_v3 = vpop.permute.xlu0 %1397 }
 0x10d   : > { %v1400_v7 = vunpack.i.h.bf16 %v1398_v3  ;;  %v1399_v35 = vunpack.i.l.bf16 %v1398_v3  ;;  %v831_v4 = vsel %vm816_vm7, %v814_v14, %v1404_v13  ;;  %v832_v16 = vsel %vm816_vm7, %v815_v24, %v1405_v25 }
 0x10f   : > { %v827_v23 = vsel %vm816_vm7, %v1953_v18, %v1399_v35  ;;  %v828_v1 = vsel %vm816_vm7, %v1956_v19, %v1400_v7  ;;  %v1455_v7 = vunpack.i.h.bf16 %v1453_v27  ;;  %v1454_v35 = vunpack.i.l.bf16 %v1453_v27 }
 0x110   : > { %v844_v12 = vsel %vm833_vm8, %v827_v23, %v1409_v9  ;;  %v845_v50 = vsel %vm833_vm8, %v828_v1, %v1410_v10  ;;  %v2124_v1 = vld [vmem:[%s2185_s2] ss:$0 sm:$0xff] }
 0x111   : > { %v1468_v29 = vpop.permute.xlu2 %1467 }
 0x112   : > { %v1418_v43 = vpop.permute.xlu1 %1417  ;;  %v1470_v58 = vunpack.i.h.bf16 %v1468_v29  ;;  %v1469_v33 = vunpack.i.l.bf16 %v1468_v29 }
 0x113   : > { %v1420_v61 = vunpack.i.h.bf16 %v1418_v43  ;;  %v1419_v59 = vunpack.i.l.bf16 %v1418_v43 }
 0x114   : > { %v1413_v49 = vpop.permute.xlu0 %1412 }
 0x115   : > { %v1415_v5 = vunpack.i.h.bf16 %v1413_v49  ;;  %v1414_v11 = vunpack.i.l.bf16 %v1413_v49  ;;  %v861_v60 = vsel %vm850_vm9, %v844_v12, %v1419_v59  ;;  %v862_v46 = vsel %vm850_vm9, %v845_v50, %v1420_v61 }
 0x117   : > { %v848_v55 = vsel %vm833_vm8, %v831_v4, %v1414_v11  ;;  %v849_v42 = vsel %vm833_vm8, %v832_v16, %v1415_v5 }
 0x118   : > { %v865_v53 = vsel %vm850_vm9, %v848_v55, %v1424_v22  ;;  %v866_v18 = vsel %vm850_vm9, %v849_v42, %v1425_v20 }
 0x11a   : > { %v1433_v36 = vpop.permute.xlu1 %1432 }
 0x11b   : > { %v1435_v37 = vunpack.i.h.bf16 %v1433_v36  ;;  %v1434_v44 = vunpack.i.l.bf16 %v1433_v36 }
 0x11c   : > { %v1428_v21 = vpop.permute.xlu0 %1427 }
 0x11d   : > { %v1430_v45 = vunpack.i.h.bf16 %v1428_v21  ;;  %v1429_v19 = vunpack.i.l.bf16 %v1428_v21  ;;  %v882_v57 = vsel %vm867_vm10, %v865_v53, %v1434_v44  ;;  %v883_v38 = vsel %vm867_vm10, %v866_v18, %v1435_v37 }
 0x11e   : > { %v891_v40 = vpack.c.bf16 %v883_v38, %v882_v57 }
 0x11f   : > { %v878_v31 = vsel %vm867_vm10, %v861_v60, %v1429_v19  ;;  %v879_v47 = vsel %vm867_vm10, %v862_v46, %v1430_v45 }
 0x120   : > { %v889_v39 = vpack.c.bf16 %v879_v47, %v878_v31  ;;  %1102 = vmatmul.msk.bf16.gmra.mxu3 %vm911_vm11, %v891_v40 }
 0x122   : > { %1100 = vmatmul.msk.bf16.gmra.mxu2 %vm911_vm11, %v889_v39  ;;  %v1448_v2 = vpop.permute.xlu1 %1447 }
 0x123   : > { %v1450_v8 = vunpack.i.h.bf16 %v1448_v2  ;;  %v1449_v51 = vunpack.i.l.bf16 %v1448_v2 }
 0x124   : > { %v1443_v0 = vpop.permute.xlu0 %1442 }
 0x125   : > { %v836_v3 = vsel %vm833_vm8, %v819_v34, %v1449_v51  ;;  %v837_v32 = vsel %vm833_vm8, %v820_v63, %v1450_v8  ;;  %v1445_v43 = vunpack.i.h.bf16 %v1443_v0  ;;  %v1444_v28 = vunpack.i.l.bf16 %v1443_v0 }
 0x127   : > { %v823_v5 = vsel %vm816_vm7, %v1977_v17, %v1444_v28  ;;  %v824_v11 = vsel %vm816_vm7, %v1974_v56, %v1445_v43 }
 0x128   : > { %v840_v9 = vsel %vm833_vm8, %v823_v5, %v1454_v35  ;;  %v841_v6 = vsel %vm833_vm8, %v824_v11, %v1455_v7 }
 0x12a   : > { %v1463_v15 = vpop.permute.xlu1 %1462 }
 0x12b   : > { %v1465_v14 = vunpack.i.h.bf16 %v1463_v15  ;;  %v1464_v24 = vunpack.i.l.bf16 %v1463_v15 }
 0x12c   : > { %v1458_v30 = vpop.permute.xlu0 %1457 }
 0x12d   : > { %v1460_v62 = vunpack.i.h.bf16 %v1458_v30  ;;  %v1459_v26 = vunpack.i.l.bf16 %v1458_v30  ;;  %v857_v4 = vsel %vm850_vm9, %v840_v9, %v1464_v24  ;;  %v858_v16 = vsel %vm850_vm9, %v841_v6, %v1465_v14 }
 0x12f   : > { %v853_v25 = vsel %vm850_vm9, %v836_v3, %v1459_v26  ;;  %v854_v13 = vsel %vm850_vm9, %v837_v32, %v1460_v62 }
 0x130   : > { %v870_v49 = vsel %vm867_vm10, %v853_v25, %v1469_v33  ;;  %v871_v41 = vsel %vm867_vm10, %v854_v13, %v1470_v58 }
 0x131   : > { %v885_v54 = vpack.c.bf16 %v871_v41, %v870_v49 }
 0x133   : > { %1096 = vmatmul.msk.bf16.gmra.mxu0 %vm911_vm11, %v885_v54 }
 0x134   : > { %v1473_v10 = vpop.permute.xlu0 %1472 }
 0x135   : > { %v1475_v20 = vunpack.i.h.bf16 %v1473_v10  ;;  %v1474_v22 = vunpack.i.l.bf16 %v1473_v10 }
 0x137   : > { %v874_v17 = vsel %vm867_vm10, %v857_v4, %v1474_v22  ;;  %v875_v56 = vsel %vm867_vm10, %v858_v16, %v1475_v20 }
 0x138   : > { %v887_v23 = vpack.c.bf16 %v875_v56, %v874_v17 }
 0x13a   : > { %1098 = vmatmul.msk.bf16.gmra.mxu1 %vm911_vm11, %v887_v23 }
 0x173   : > { %v971_v55 = vpop.f32.mrf.mxu2 }
 0x174   : > { %v972_v42 = vadd.f32 %v2124_v1, %v971_v55 }
 0x176   : > { %v999_v61 = vmax.f32 %v972_v42, 0.0  ;;  %v981_v59 = vpop.f32.mrf.mxu3 }
 0x177   : > { %v982_v36 = vadd.f32 %v2124_v1, %v981_v59 }
 0x178   : > { %1016 = vst.msk [vmem:[%s2131_s10 + $0x40] sm:$0xff] %vm1007_vm12, %v999_v61 }
 0x179   : > { %v1003_v37 = vmax.f32 %v982_v36, 0.0 }
 0x17b   : > { %1020 = vst.msk [vmem:[%s2131_s10 + $0x60] sm:$0xff] %vm1007_vm12, %v1003_v37  ;;  %v973_v44 = vpop.f32.mrf.mxu2 }
 0x17c   : > { %v974_v12 = vadd.f32 %v2124_v1, %v973_v44 }
 0x17e   : > { %v1000_v50 = vmax.f32 %v974_v12, 0.0  ;;  %v983_v21 = vpop.f32.mrf.mxu3 }
 0x17f   : > { %v984_v53 = vadd.f32 %v2124_v1, %v983_v21 }
 0x180   : > { %1017 = vst.msk [vmem:[%s2131_s10 + $0x48] sm:$0xff] %vm1007_vm12, %v1000_v50 }
 0x181   : > { %v1004_v18 = vmax.f32 %v984_v53, 0.0 }
 0x183   : > { %1021 = vst.msk [vmem:[%s2131_s10 + $0x68] sm:$0xff] %vm1007_vm12, %v1004_v18 }
 0x185   : > { %v961_v45 = vpop.f32.mrf.mxu1 }
 0x186   : > { %v962_v19 = vadd.f32 %v2124_v1, %v961_v45 }
 0x187   : > { %v951_v57 = vpop.f32.mrf.mxu0 }
 0x188   : > { %v952_v38 = vadd.f32 %v2124_v1, %v951_v57  ;;  %v995_v60 = vmax.f32 %v962_v19, 0.0 }
 0x18a   : > { %v991_v46 = vmax.f32 %v952_v38, 0.0  ;;  %1012 = vst.msk [vmem:[%s2131_s10 + $0x20] sm:$0xff] %vm1007_vm12, %v995_v60 }
 0x18c   : > { %1008 = vst.msk [vmem:[%s2131_s10] sm:$0xff] %vm1007_vm12, %v991_v46 }
 0x18d   : > { %v963_v40 = vpop.f32.mrf.mxu1 }
 0x18e   : > { %v964_v31 = vadd.f32 %v2124_v1, %v963_v40 }
 0x18f   : > { %v953_v47 = vpop.f32.mrf.mxu0 }
 0x190   : > { %v954_v27 = vadd.f32 %v2124_v1, %v953_v47  ;;  %v996_v39 = vmax.f32 %v964_v31, 0.0 }
 0x192   : > { %v992_v0 = vmax.f32 %v954_v27, 0.0  ;;  %1013 = vst.msk [vmem:[%s2131_s10 + $0x28] sm:$0xff] %vm1007_vm12, %v996_v39 }
 0x194   : > { %1009 = vst.msk [vmem:[%s2131_s10 + $0x8] sm:$0xff] %vm1007_vm12, %v992_v0 }
 0x1a3   : > { %v986_v2 = vpop.f32.mrf.mxu3 }
 0x1a4   : > { %v987_v48 = vadd.f32 %v2124_v1, %v986_v2 }
 0x1a5   : > { %v976_v52 = vpop.f32.mrf.mxu2 }
 0x1a6   : > { %v977_v29 = vadd.f32 %v2124_v1, %v976_v52  ;;  %v1005_v8 = vmax.f32 %v987_v48, 0.0 }
 0x1a8   : > { %v1001_v51 = vmax.f32 %v977_v29, 0.0  ;;  %1022 = vst.msk [vmem:[%s2131_s10 + $0x70] sm:$0xff] %vm1007_vm12, %v1005_v8 }
 0x1aa   : > { %1018 = vst.msk [vmem:[%s2131_s10 + $0x50] sm:$0xff] %vm1007_vm12, %v1001_v51 }
 0x1ab   : > { %v988_v30 = vpop.f32.mrf.mxu3 }
 0x1ac   : > { %v989_v58 = vadd.f32 %v2124_v1, %v988_v30 }
 0x1ad   : > { %v978_v33 = vpop.f32.mrf.mxu2 }
 0x1ae   : > { %v979_v34 = vadd.f32 %v2124_v1, %v978_v33  ;;  %v1006_v63 = vmax.f32 %v989_v58, 0.0 }
 0x1b0   : > { %v1002_v62 = vmax.f32 %v979_v34, 0.0  ;;  %1023 = vst.msk [vmem:[%s2131_s10 + $0x78] sm:$0xff] %vm1007_vm12, %v1006_v63  ;;  %v956_v26 = vpop.f32.mrf.mxu0 }
 0x1b1   : > { %v957_v3 = vadd.f32 %v2124_v1, %v956_v26 }
 0x1b2   : > { %1019 = vst.msk [vmem:[%s2131_s10 + $0x58] sm:$0xff] %vm1007_vm12, %v1002_v62 }
 0x1b3   : > { %v993_v32 = vmax.f32 %v957_v3, 0.0 }
 0x1b5   : > { %1010 = vst.msk [vmem:[%s2131_s10 + $0x10] sm:$0xff] %vm1007_vm12, %v993_v32 }
 0x1b7   : > { %v966_v43 = vpop.f32.mrf.mxu1 }
 0x1b8   : > { %v967_v28 = vadd.f32 %v2124_v1, %v966_v43  ;;  %v958_v15 = vpop.f32.mrf.mxu0 }
 0x1b9   : > { %v959_v25 = vadd.f32 %v2124_v1, %v958_v15 }
 0x1ba   : > { %v997_v13 = vmax.f32 %v967_v28, 0.0 }
 0x1bb   : > { %v994_v49 = vmax.f32 %v959_v25, 0.0 }
 0x1bc   : > { %1014 = vst.msk [vmem:[%s2131_s10 + $0x30] sm:$0xff] %vm1007_vm12, %v997_v13 }
 0x1bd   : > { %1011 = vst.msk [vmem:[%s2131_s10 + $0x18] sm:$0xff] %vm1007_vm12, %v994_v49 }
 0x1bf   : > { %v968_v41 = vpop.f32.mrf.mxu1 }
 0x1c0   : > { %v969_v7 = vadd.f32 %v2124_v1, %v968_v41 }
 0x1c2   : > { %v998_v35 = vmax.f32 %v969_v7, 0.0 }
 0x1c4   : > { %1015 = vst.msk [vmem:[%s2131_s10 + $0x38] sm:$0xff] %vm1007_vm12, %v998_v35 }
 0x1c5 PF: > { %s13_s12 = sadd.s32 1, %s1483_s12  }
 0x1c6   : > { %p10_p4 = scmp.ge.s32.totalorder %s13_s12, 6  }
 0x1c8   :  { %12 = sbr.rel (!%p10_p4) target bundleno = 1 (0x1), region = 62 }

</bundles_post_ra>
